<compile_context>
chip_gen: v7x
topology: tpu7x:2x2x1
jax: 0.10.0
libtpu: 0.0.40
codegen_flags: <defaults>
</compile_context>

<pallas_src>
import numpy as np
import jax
import jax.numpy as jnp
from jax import lax
from jax.experimental import pallas as pl
from jax.experimental.pallas import tpu as pltpu

B = 2                    # batch
D_IN = 16                # depth of the viewed 3D input
KD = 7                   # conv kernel depth
D_OUT = D_IN - KD + 1    # = 10
C_OUT = 24               # conv out channels
HW = 7 * 7               # = 49
K_FLAT = KD * HW         # = 343
F_LIN = C_OUT * D_OUT    # = 240
N_CLS = 10
IN_FLAT = D_IN * HW      # = 784


# ---------------------------------------------------------------------------
# Kernel: one [B,784] x [784,10] matmul (RHS stored lane-dense as [10,784]),
# bias add, log-softmax.  Everything resident in VMEM, gridless.
# ---------------------------------------------------------------------------
def _kernel(x_ref, wt_ref, b_ref, out_ref):
    # x_ref : [B, 784]    flattened input
    # wt_ref: [10, 784]   folded conv+linear weight, TRANSPOSED (lane-dense K)
    # b_ref : [1, 10]     linear bias
    # out_ref: [B, 10]    log-probabilities
    logits = lax.dot_general(
        x_ref[...], wt_ref[...],
        dimension_numbers=(((1,), (1,)), ((), ())),   # contract K on last dims
        preferred_element_type=jnp.float32,
    ) + b_ref[...]
    # LogSoftmax over the class dim (f32 throughout; [B,10] is effectively free).
    m = jnp.max(logits, axis=1, keepdims=True)
    lse = jnp.log(jnp.sum(jnp.exp(logits - m), axis=1, keepdims=True)) + m
    out_ref[...] = (logits - lse).astype(out_ref.dtype)


# ---------------------------------------------------------------------------
# One-time host-side parameter fold (numpy, no XLA ops in the forward path).
# ---------------------------------------------------------------------------
def prepare_params(conv_w, lin_w, lin_b):
    """Fold Conv3d weight [24,1,7,7,7] and Linear weight [10,240] into
    Mt[10, 784] (transposed, lane-dense) plus bias [1, 10].

    logits[b,c] = sum_{o,d} conv[b,o,d] * W1[c, o*10 + d]
                = sum_i x_flat[b,i] * M[i,c]
    with flat input index i = D*49 + kh*7 + kw (D = 0..15), and the depth
    coupling D = d + kd.
    """
    cw = np.asarray(jax.device_get(conv_w), dtype=np.float64)
    lw_ = np.asarray(jax.device_get(lin_w), dtype=np.float64)
    lb_ = np.asarray(jax.device_get(lin_b), dtype=np.float64)

    w0 = cw.reshape(C_OUT, KD, HW)                 # [24, 7, 49]  (o, kd, s)
    lw = lw_.reshape(N_CLS, C_OUT, D_OUT)          # [10, 24, 10] (c, o, d), channel-major flatten
    # T[d, kd, s, c] = sum_o w0[o, kd, s] * lw[c, o, d]
    T = np.einsum('oks,cod->dksc', w0, lw)         # [10, 7, 49, 10]
    # M[D, s, c] = sum_{d : 0 <= D-d < 7} T[d, D-d, s, c]
    M = np.zeros((D_IN, HW, N_CLS), dtype=np.float64)
    for d in range(D_OUT):                         # host-only, runs once
        M[d:d + KD] += T[d]
    Mt = M.reshape(IN_FLAT, N_CLS).T               # [10, 784]  lane-dense
    return (jnp.asarray(Mt, dtype=jnp.float32),
            jnp.asarray(lb_.reshape(1, N_CLS), dtype=jnp.float32))


# ---------------------------------------------------------------------------
# Forward: single gridless pallas_call on prebuilt folded parameters.
# ---------------------------------------------------------------------------
def conv3d_then_linear_19(x, mt, lb):
    """x: [B, 784] f32; mt: [10, 784] f32 (folded, transposed); lb: [1, 10] f32."""
    b = x.shape[0]
    cost = pl.CostEstimate(
        flops=2 * b * IN_FLAT * N_CLS + 6 * b * N_CLS,
        transcendentals=b * (N_CLS + 1),           # exp per logit + log per row
        bytes_accessed=4 * (b * IN_FLAT + N_CLS * IN_FLAT + N_CLS + b * N_CLS),
    )
    vmem = pltpu.MemorySpace.VMEM
    return pl.pallas_call(
        _kernel,
        out_shape=jax.ShapeDtypeStruct((b, N_CLS), jnp.float32),
        in_specs=[
            pl.BlockSpec(memory_space=vmem),       # x
            pl.BlockSpec(memory_space=vmem),       # Mt
            pl.BlockSpec(memory_space=vmem),       # bias
        ],
        out_specs=pl.BlockSpec(memory_space=vmem),
        cost_estimate=cost,
    )(x, mt, lb)


# ---------------------------------------------------------------------------
# Pure-JAX reference matching the PyTorch forward exactly.
# ---------------------------------------------------------------------------
def _reference(x, conv_w, lin_w, lin_b):
    b = x.shape[0]
    x5 = x.reshape(b, 1, D_IN, 7, 7)
    conv = lax.conv_general_dilated(
        x5, conv_w, window_strides=(1, 1, 1), padding="VALID",
        dimension_numbers=("NCDHW", "OIDHW", "NCDHW"),
    )                                              # [B, 24, 10, 1, 1]
    flat = conv.reshape(b, F_LIN)                  # channel-major flatten
    logits = flat @ lin_w.T + lin_b
    return jax.nn.log_softmax(logits, axis=1)


if __name__ == "__main__":
    key = jax.random.PRNGKey(0)
    kx, kw0, kw1, kb1 = jax.random.split(key, 4)

    # Deterministic synthetic inputs / parameters (PyTorch-style uniform init bounds).
    x = jax.random.normal(kx, (B, IN_FLAT), dtype=jnp.float32)            # [2, 784]
    bound0 = 1.0 / (K_FLAT ** 0.5)
    conv_w = jax.random.uniform(kw0, (C_OUT, 1, KD, 7, 7), jnp.float32,
                                minval=-bound0, maxval=bound0)
    bound1 = 1.0 / (F_LIN ** 0.5)
    lin_w = jax.random.uniform(kw1, (N_CLS, F_LIN), jnp.float32,
                               minval=-bound1, maxval=bound1)
    lin_b = jax.random.uniform(kb1, (N_CLS,), jnp.float32,
                               minval=-bound1, maxval=bound1)

    # One-time host-side weight fold (outside the per-call path).
    mt, lb = prepare_params(conv_w, lin_w, lin_b)

    out = jax.block_until_ready(conv3d_then_linear_19(x, mt, lb))
    ref = jax.block_until_ready(_reference(x, conv_w, lin_w, lin_b))

    assert out.shape == (B, N_CLS)
    # Note: the fold changes FP accumulation order vs. conv-then-linear, so
    # bit-exact parity is not expected; 1e-4 allclose is the contract.
    assert jnp.allclose(out, ref, atol=1e-4, rtol=1e-4), (out, ref)
    print("KERNEL_OK")
</pallas_src>

<mosaic_0001>
module attributes {stable_mosaic.version = 11 : i64} {
  func.func @_kernel(%arg0: memref<2x784xf32, #tpu.memory_space<vmem>>, %arg1: memref<10x784xf32, #tpu.memory_space<vmem>>, %arg2: memref<1x10xf32, #tpu.memory_space<vmem>>, %arg3: memref<2x10xf32, #tpu.memory_space<vmem>>) attributes {dimension_semantics = [], scalar_prefetch = 0 : i64, scratch_operands = 0 : i64, tpu.core_type = #tpu.core_type<tc>} {
    %c0 = arith.constant 0 : index
    %c0_0 = arith.constant 0 : index
    %0 = vector.load %arg0[%c0, %c0_0] : memref<2x784xf32, #tpu.memory_space<vmem>>, vector<2x784xf32>
    %c0_1 = arith.constant 0 : index
    %c0_2 = arith.constant 0 : index
    %1 = vector.load %arg1[%c0_1, %c0_2] : memref<10x784xf32, #tpu.memory_space<vmem>>, vector<10x784xf32>
    %cst = arith.constant dense<0.000000e+00> : vector<2x10xf32>
    %2 = tpu.matmul %0, %1, %cst {dimension_numbers = #tpu.dot_dimension_numbers<[1], [1], [0], [0], [0, 0, 1, 0], [], []>} : vector<2x784xf32>, vector<10x784xf32>, vector<2x10xf32> -> vector<2x10xf32>
    %c0_3 = arith.constant 0 : index
    %c0_4 = arith.constant 0 : index
    %3 = vector.load %arg2[%c0_3, %c0_4] : memref<1x10xf32, #tpu.memory_space<vmem>>, vector<1x10xf32>
    %4 = vector.broadcast %3 : vector<1x10xf32> to vector<2x10xf32>
    %5 = arith.addf %2, %4 : vector<2x10xf32>
    %cst_5 = arith.constant dense<0xFF800000> : vector<2xf32>
    %6 = vector.multi_reduction <maximumf>, %5, %cst_5 [1] : vector<2x10xf32> to vector<2xf32>
    %7 = vector.shape_cast %6 : vector<2xf32> to vector<2x1xf32>
    %8 = vector.broadcast %7 : vector<2x1xf32> to vector<2x10xf32>
    %9 = arith.subf %5, %8 : vector<2x10xf32>
    %10 = math.exp %9 : vector<2x10xf32>
    %cst_6 = arith.constant dense<0.000000e+00> : vector<2xf32>
    %11 = vector.multi_reduction <add>, %10, %cst_6 [1] : vector<2x10xf32> to vector<2xf32>
    %12 = vector.shape_cast %11 : vector<2xf32> to vector<2x1xf32>
    %13 = math.log %12 : vector<2x1xf32>
    %14 = arith.addf %13, %7 : vector<2x1xf32>
    %15 = vector.broadcast %14 : vector<2x1xf32> to vector<2x10xf32>
    %16 = arith.subf %5, %15 : vector<2x10xf32>
    %c0_7 = arith.constant 0 : index
    %c0_8 = arith.constant 0 : index
    %17 = vector.load %arg3[%c0_7, %c0_8] : memref<2x10xf32, #tpu.memory_space<vmem>>, vector<2x10xf32>
    tpu.vector_store %arg3[%c0_7, %c0_8], %16 {strides = array<i32>} : memref<2x10xf32, #tpu.memory_space<vmem>>, vector<2x10xf32>,
    return
  }
}

</mosaic_0001>

<bundles_post_ra>
// kernel: tpu_custom_call.1
= control target key start
LH: loop header
LB: loop body
LE: loop exit
PB: predicated region body
PF: predicated region fallthrough
CT: control target
= control target key end

     0   :  { %8 = vsyncpa [#allocation3], 0  ;;  %s629_s0 = inlined_call_operand.hbm [shape: f32[2,784], index: 0, kind: input, shape index: {}]   ;;  %s630_s1 = inlined_call_operand.hbm [shape: f32[10,784], index: 1, kind: input, shape index: {}]   ;;  %s631_s2 = inlined_call_operand.vmem [shape: f32[1,10], index: 2, kind: input, shape index: {}]   ;;  %s632_s3 = inlined_call_operand.hbm [shape: f32[2,10], index: 3, kind: output, shape index: {}]  }
   0x1   :  { %9 = vsyncpa [#allocation6], 0 }
   0x2   :  { %10 = vsyncpa [#allocation4], 0  ;;  %s548_s12 = smov [#allocation2]   ;;  %s549_s14 = smov [#allocation5]  }
   0x3   :  { %s17_s13 = sshll.u32 %s548_s12, 4  ;;  %s26_s15 = sshll.u32 %s549_s14, 4  ;;  %s18_s13 = int_to_ptr.vmem [resolvable:$true] %s17_s13  ;;  %s577_s15 = int_to_ptr.vmem [resolvable:$true] %s26_s15 }
   0x4   :  { %s476_s18 = scalar_lea.hbm %s629_s0, 224 }
   0x5   :  { %p477_p0 = scmp.ne.s32.totalorder %s629_s0, %s476_s18  ;;  %p480_p1 = scmp.lt.u32.totalorder %s476_s18, %s629_s0 }
   0x7   :  { %p482_p2 = pnand %p480_p1, %p477_p0 }
   0x9   :  { %485 = shalt.err (!%p482_p2)
}
   0xa   :  { %s486_s23 = scalar_lea.vmem %s18_s13, 224  ;;  %p491_p4 = scmp.lt.s32.totalorder %s18_s13, %s18_s13 }
   0xb   :  { %p487_p3 = scmp.ne.s32.totalorder %s18_s13, %s486_s23  ;;  %p492_p5 = scmp.lt.s32.totalorder %s486_s23, %s486_s23 }
   0xd   :  { %p493_p6 = por %p492_p5, %p491_p4 }
   0xf   :  { %p494_p7 = pnand %p493_p6, %p487_p3 }
  0x11   :  { %497 = shalt.err (!%p494_p7)
}
  0x12   :  { %20 = dma.hbm_to_vmem [thread:$0]  %s629_s0, 224, %s18_s13, [#allocation3]  }
  0x13   :  { %s498_s28 = scalar_lea.hbm %s630_s1, 1792 }
  0x14   :  { %p499_p8 = scmp.ne.s32.totalorder %s630_s1, %s498_s28  ;;  %p502_p9 = scmp.lt.u32.totalorder %s498_s28, %s630_s1 }
  0x16   :  { %p504_p10 = pnand %p502_p9, %p499_p8 }
  0x18   :  { %507 = shalt.err (!%p504_p10)
}
  0x19   :  { %s508_s6 = scalar_lea.vmem %s577_s15, 1792  ;;  %p513_p12 = scmp.lt.s32.totalorder %s577_s15, %s577_s15 }
  0x1a   :  { %p509_p11 = scmp.ne.s32.totalorder %s577_s15, %s508_s6  ;;  %p514_p13 = scmp.lt.s32.totalorder %s508_s6, %s508_s6 }
  0x1c   :  { %p515_p0 = por %p514_p13, %p513_p12 }
  0x1e   :  { %p516_p1 = pnand %p515_p0, %p509_p11 }
  0x20   :  { %519 = shalt.err (!%p516_p1)
}
  0x21   :  { %s550_s0 = smov 896   ;;  %s551_s7 = smov 56  }
  0x22   :  { %32 = dma.hbm_to_vmem [thread:$0]  %s630_s1, 1792, %s577_s15, [#allocation6], %s550_s0, %s550_s0, %s551_s7  }
  0x23   :  { %542 = dma.done.wait [#allocation3], 224  }
  0x24   :  { %543 = vsyncadd [#allocation3], 4294967072 }
  0x25   :  { %544 = dma.done.wait [#allocation6], 1792  }
  0x26   :  { %545 = vsyncadd [#allocation6], 4294965504  ;;  %v70_v0 = vlaneseq  ;;  %v552_v1 = vmov 1983009808   ;;  %v44_v6 = vld [vmem:[#allocation5 + $0x8] sm:$0xff]  ;;  %v43_v11 = vld [vmem:[#allocation5] sm:$0xff] }
  0x27   :  { %v68_v2 = vunpack.c.l.s4 %v552_v1  ;;  %v51_v7 = vld [vmem:[#allocation5 + $0x40] sm:$0x3]  ;;  %v48_v8 = vld [vmem:[#allocation5 + $0x28] sm:$0xff]  ;;  %v50_v12 = vld [vmem:[#allocation5 + $0x38] sm:$0x3]  ;;  %v553_v31 = vmov 0.0|0.0  }
  0x28   :  { %v71_v3 = vshrl.u32 %v70_v0, 7  ;;  %v439_v9 = vpack.c.bf16 %v51_v7, %v44_v6  ;;  %v55_v10 = vld [vmem:[#allocation5 + $0x60] sm:$0x3]  ;;  %v441_v14 = vpack.c.bf16 %v50_v12, %v43_v11  ;;  %v54_v16 = vld [vmem:[#allocation5 + $0x58] sm:$0x3]  ;;  %v45_v27 = vld [vmem:[#allocation5 + $0x10] sm:$0xff] }
  0x29   :  { %v69_v4 = vunpack.c.0.s8 %v68_v2  ;;  %v447_v13 = vpack.c.bf16 %v55_v10, %v48_v8  ;;  %v47_v15 = vld [vmem:[#allocation5 + $0x20] sm:$0xff]  ;;  %v41_v17 = vld [vmem:[#allocation2] sm:$0xff]  ;;  %v42_v21 = vld [vmem:[#allocation2 + $0x8] sm:$0x3f]  ;;  %vm105_vm0 = vcmask 130048   ;;  %vm554_vm2 = vmmov 0  }
  0x2a   :  { %440 = vmatprep.subr.bf16.mxu1 %v439_v9  ;;  %v449_v18 = vpack.c.bf16 %v54_v16, %v47_v15  ;;  %v66_v19 = vcombine.high %v41_v17, %v41_v17  ;;  %v46_v22 = vld [vmem:[#allocation5 + $0x18] sm:$0xff]  ;;  %v53_v23 = vld [vmem:[#allocation5 + $0x50] sm:$0x3]  ;;  %v52_v28 = vld [vmem:[#allocation5 + $0x48] sm:$0x3]  ;;  %v83_v37 = vcombine.high %v42_v21, %v42_v21  ;;  %v555_v38 = vmov 0.0  }
  0x2b   :  { %v72_v5 = vsub.s32 %v69_v4, %v71_v3  ;;  %448 = vmatprep.subr.bf16.mxu0 %v447_v13  ;;  %442 = vmatpush1.bf16.xpose.msra.mxu1 %v441_v14  ;;  %v443_v25 = vpack.c.bf16 %v53_v23, %v46_v22  ;;  %v49_v32 = vld [vmem:[#allocation5 + $0x30] sm:$0xff]  ;;  %v56_v33 = vld [vmem:[#allocation5 + $0x68] sm:$0x3]  ;;  %v445_v34 = vpack.c.bf16 %v52_v28, %v45_v27  ;;  %vm453_vm1 = vmpackc.low %vm105_vm0, %vm105_vm0  ;;  %vm394_vm3 = vcmask 74752  }
  0x2c   :  { %450 = vmatpush1.bf16.xpose.msra.mxu0 %v449_v18  ;;  %v452_v35 = vpack.c.bf16 %v56_v33, %v49_v32  ;;  %v425_v40 = vld [vmem:[%s631_s2] ss:$0 sm:$0xff]  ;;  %s556_s2 = smov [#allocation7]  }
  0x2d   :  { %v73_v20 = vrot.slane %v41_v17, %v72_v5  ;;  %v90_v24 = vrot.slane %v42_v21, %v72_v5  ;;  %v80_v29 = vrot.slane %v66_v19, %v72_v5  ;;  %444 = vmatprep.subr.bf16.mxu1 %v443_v25  ;;  %451 = vmatprep.subr.bf16.mxu0 %v553_v31  ;;  %s415_s11 = sshll.u32 %s556_s2, 4  ;;  %s416_s11 = int_to_ptr.vmem [resolvable:$true] %s415_s11 }
  0x2e   :  { %v97_v39 = vrot.slane %v83_v37, %v72_v5  ;;  %s520_s12 = scalar_lea.vmem %s416_s11, 32  ;;  %p525_p3 = scmp.lt.s32.totalorder %s416_s11, %s416_s11 }
  0x2f   :  { %v81_v26 = vcombine.high %v73_v20, %v73_v20  ;;  %v98_v30 = vcombine.high %v90_v24, %v90_v24  ;;  %v82_v36 = vcombine.high %v80_v29, %v80_v29  ;;  %p521_p2 = scmp.ne.s32.totalorder %s416_s11, %s520_s12  ;;  %p526_p4 = scmp.lt.s32.totalorder %s520_s12, %s520_s12 }
  0x31   :  { %178 = vmatprep.mubr.f32.mxu1 %v81_v26  ;;  %318 = vmatprep.mubr.f32.mxu0 %v98_v30  ;;  %p527_p5 = por %p526_p4, %p525_p3 }
  0x32   :  { %179 = vmatmul.mubr.f32.vlgmr.msra.gmra.mrb[0].mxu1 %v73_v20 }
  0x33   :  { %319 = vmatmul.mubr.f32.vlgmr.msra.gmra.mrb[0].mxu0 %v90_v24  ;;  %446 = vmatpush1.bf16.xpose.msra.mxu1 %v445_v34  ;;  %p528_p6 = pnand %p527_p5, %p521_p2 }
  0x34   :  { %454 = vmatpush3.bf16.xpose.msk.msra.mxu0 %vm453_vm1, %v452_v35  ;;  %248 = vmatprep.mubr.f32.mxu1 %v82_v36 }
  0x35   :  { %436 = vmatprep.mubr.msk.f32.mxu0 %vm554_vm2, %v555_v38 }
  0x3a   :  { %249 = vmatmul.mubr.f32.vlgmr.msra.gmra.mrb[0].mxu1 %v80_v29 }
  0x3b   :  { %437 = vmatmul.mubr.msk.f32.vlgmr.msra.gmra.mrb[0].mxu0 %vm105_vm0, %v97_v39 }
 0x10d   :  { %v250_v41 = vpop.f32.mrb[0].mxu1 }
 0x10e   :  { %v455_v42 = vadd.f32 %v425_v40, %v250_v41  ;;  %v390_v43 = vpop.f32.mrb[0].mxu0  ;;  %v252_v44 = vpop.f32.mrb[1].mxu1 }
 0x10f   :  { %v438_v45 = vpop.f32.mrb[1].mxu0 }
 0x110   :  { %v456_v46 = vadd.f32 %v455_v42, %v390_v43 }
 0x112   :  { %v395_v47 = vsel %vm394_vm3, %v456_v46, -inf }
 0x113   :  { %396 = vmax.xlane.f32.xlu0 %v395_v47 }
 0x1a0   :  { %v397_v48 = vpop.xlane.xlu0 %396 }
 0x1a1   :  { %v398_v49 = vsub.f32 %v456_v46, %v397_v48 }
 0x1a3   :  { %v399_v50 = vmul.f32 1.442695, %v398_v49 }
 0x1a5   :  { %472 = vpow2.f32 %v399_v50 }
 0x1af   :  { %v473_v51 = vpop.eup %472 }
 0x1b0   :  { %v401_v52 = vsel %vm394_vm3, %v473_v51, 0.0 }
 0x1b1   :  { %402 = vadd.xlane.f32.xlu0 %v401_v52 }
 0x23e   :  { %v403_v53 = vpop.xlane.xlu0 %402 }
 0x23f   :  { %474 = vlog2.f32 %v403_v53 }
 0x249   :  { %v475_v54 = vpop.eup %474 }
 0x24a   :  { %v405_v55 = vmul.f32 0.6931472, %v475_v54 }
 0x24c   :  { %v406_v56 = vadd.f32 %v405_v55, %v397_v48 }
 0x24e   :  { %v407_v57 = vsub.f32 %v456_v46, %v406_v56 }
 0x250   :  { %408 = vst.msk [vmem:[#allocation7] sm:$0x3] %vm394_vm3, %v407_v57 }
 0x251   :  { %531 = shalt.err (!%p528_p6)
}
 0x252   :  { %s532_s15 = scalar_lea.hbm %s632_s3, 32 }
 0x253   :  { %p533_p7 = scmp.ne.s32.totalorder %s632_s3, %s532_s15  ;;  %p536_p8 = scmp.lt.u32.totalorder %s532_s15, %s632_s3 }
 0x255   :  { %p538_p9 = pnand %p536_p8, %p533_p7 }
 0x257   :  { %541 = shalt.err (!%p538_p9)
}
 0x258   :  { %418 = dma.vmem_to_hbm [thread:$0]  %s416_s11, 32, %s632_s3, [#allocation4]  }
 0x259   :  { %546 = dma.done.wait [#allocation4], 32  }
 0x25a   :  { %547 = vsyncadd [#allocation4], 4294967264 }
 0x25b   :  { %422 = vsyncpa [#allocation3], 1 }
 0x25c   :  { %423 = vsyncpa [#allocation6], 1 }
 0x25d   :  { %424 = vsyncpa [#allocation4], 1 }

</bundles_post_ra>
